<compile_context>
chip_gen: v5e
topology: v5e:2x2
jax: 0.10.0
libtpu: 0.0.40
codegen_flags: <defaults>
</compile_context>

<pallas_src>
import functools

import jax
import jax.numpy as jnp
from jax.experimental import pallas as pl
from jax.experimental.pallas import tpu as pltpu


def _round_up(x, m):
    return ((x + m - 1) // m) * m


def _sublane_rows(dtype):
    # Rows per packed sublane group: 8 for f32, 16 for bf16, 32 for int8.
    return max(8, 32 // jnp.dtype(dtype).itemsize)


@functools.lru_cache(maxsize=1)
def _chip_profile():
    """(vmem_capacity_bytes, is_v5e, is_v7x) — best-effort, with safe fallbacks."""
    vmem_cap = 128 * 1024 * 1024
    kind = ""
    try:
        kind = jax.devices()[0].device_kind.lower()
    except Exception:
        pass
    try:
        info = pltpu.get_tpu_info()
        vmem_cap = int(getattr(info, "vmem_capacity_bytes", vmem_cap))
    except Exception:
        pass
    is_v7 = ("v7" in kind) or (vmem_cap <= 64 * 1024 * 1024)
    is_v5 = "v5" in kind
    return vmem_cap, is_v5, is_v7


def _default_tiles():
    """Per-generation (tm, tf, vmem_limit_bytes)."""
    vmem_cap, is_v5, is_v7 = _chip_profile()
    if is_v7:
        # 64 MiB/TC: halve the weight slabs (tf=256), keep AI with tm=512.
        tm, tf, vmem_limit = 512, 256, 44 * 1024 * 1024
    elif is_v5:
        # Crossover ~240 FLOP/B: tm=512 is decisively MXU-bound.
        tm, tf, vmem_limit = 512, 512, 80 * 1024 * 1024
    else:
        # v6e-class (128 MiB VMEM): crossover ~650 FLOP/B -> tm~1024 in bf16.
        tm, tf, vmem_limit = 1024, 512, 100 * 1024 * 1024
    vmem_limit = min(vmem_limit, int(vmem_cap * 0.78))
    return tm, tf, vmem_limit


def _qwen_mlp_kernel(x_ref, w12_ref, wc_ref, o_ref, acc_ref, *, tf):
    # x_ref:   (tm, H)      token tile (invariant over the F axis)
    # w12_ref: (H, 2*tf)    fused [W1_tile | W2_tile] up-projection slab
    # wc_ref:  (tf, H)      down-projection tile
    # o_ref:   (tm, H)      output (same block for every k -> accumulator)
    # acc_ref: (tm, H) f32  VMEM scratch accumulator
    k = pl.program_id(1)

    # Cast activations to the weight compute dtype so bf16 weights run the
    # bf16 MXU path (f32 accumulation via preferred_element_type).
    x = x_ref[...].astype(w12_ref.dtype)
    a12 = jnp.dot(x, w12_ref[...], preferred_element_type=jnp.float32)  # (tm, 2*tf)
    a1 = a12[:, :tf]
    a2 = a12[:, tf:]
    inter = a1 * (a2 * jax.nn.sigmoid(a2))  # SwiGLU gate, f32

    part = jnp.dot(inter.astype(wc_ref.dtype), wc_ref[...],
                   preferred_element_type=jnp.float32)

    @pl.when(k == 0)
    def _():
        acc_ref[...] = part          # first step: direct write, no zero-init RMW

    @pl.when(k > 0)
    def _():
        acc_ref[...] += part

    @pl.when(k == pl.num_programs(1) - 1)
    def _():
        o_ref[...] = acc_ref[...].astype(o_ref.dtype)


def prepare_qwen_mlp_weights(w1, w2, c_proj, *, tf=None, compute_dtype=None):
    """One-time weight preparation (hoisted out of the per-call path).

    w1, w2: [F, H] (torch Linear layout); c_proj: [H, F].
    F is zero-padded up to a multiple of the F tile (no silent tile shrink).
    Returns (w12_fused [H, 2*F_pad] interleaved per F-tile, wc_t [F_pad, H], tf_eff).

    For bf16 inference pass compute_dtype=jnp.bfloat16 (the kernel casts the
    activations to the weight dtype, so both matmuls run on the bf16 MXU path).
    """
    # TODO(synk): int8 (v5e/v6e) / fp8 (v7x) weight quantization with per-tile
    # scales for the weight-bandwidth-bound decode regime.
    F_dim, H = w1.shape
    if tf is None:
        _, tf, _ = _default_tiles()
    tf_eff = min(tf, _round_up(F_dim, 128))
    tf_eff = _round_up(tf_eff, 128)
    F_pad = _round_up(F_dim, tf_eff)

    if compute_dtype is not None:
        w1 = w1.astype(compute_dtype)
        w2 = w2.astype(compute_dtype)
        c_proj = c_proj.astype(compute_dtype)

    if F_pad != F_dim:
        pad = F_pad - F_dim
        # Zero rows in W1/W2 -> zero gate; zero rows in Wc^T -> zero contribution.
        w1 = jnp.pad(w1, ((0, pad), (0, 0)))
        w2 = jnp.pad(w2, ((0, pad), (0, 0)))
        c_proj = jnp.pad(c_proj, ((0, 0), (0, pad)))

    nk = F_pad // tf_eff
    w1_t = w1.T  # (H, F_pad)
    w2_t = w2.T  # (H, F_pad)
    # Interleave per F-tile so grid step k reads one contiguous (H, 2*tf) slab:
    # columns [k*2tf : k*2tf+tf] = W1 tile k, [k*2tf+tf : (k+1)*2tf] = W2 tile k.
    w12 = jnp.concatenate(
        [w1_t.reshape(H, nk, tf_eff), w2_t.reshape(H, nk, tf_eff)], axis=2
    ).reshape(H, 2 * F_pad)
    wc_t = c_proj.T  # (F_pad, H)
    return w12, wc_t, tf_eff


def qwen_mlp_prepared(hidden_states, w12, wc_t, tf, *, tm=None, vmem_limit_bytes=None):
    """hidden_states: [B, S, H]; w12: [H, 2*F_pad] (prepared); wc_t: [F_pad, H]."""
    B, S, H = hidden_states.shape
    F_pad = wc_t.shape[0]
    assert w12.shape == (H, 2 * F_pad), "w12 must be the prepared fused [H, 2F] slab"
    assert F_pad % tf == 0, "F must be a multiple of tf (use prepare_qwen_mlp_weights)"
    nk = F_pad // tf
    M = B * S

    def_tm, _, def_vmem = _default_tiles()
    if tm is None:
        tm = def_tm
    if vmem_limit_bytes is None:
        vmem_limit_bytes = def_vmem

    sub = _sublane_rows(hidden_states.dtype)
    x2d = hidden_states.reshape(M, H)
    tm_eff = _round_up(min(tm, _round_up(M, sub)), sub)
    M_pad = _round_up(M, tm_eff)

    # v7x megacore: make sure both TensorCores get a token tile when possible.
    _, _, is_v7 = _chip_profile()
    if is_v7 and (M_pad // tm_eff) < 2 and M > sub:
        tm_half = _round_up(-(-M // 2), sub)
        if tm_half < tm_eff:
            tm_eff = tm_half
            M_pad = _round_up(M, tm_eff)
    # TODO(synk): for true decode (M <= one sublane group) on v7x, split the F
    # reduction across TensorCores (core_map / CORE_PARALLEL + combine) instead.

    if M_pad != M:
        x2d = jnp.pad(x2d, ((0, M_pad - M), (0, 0)))

    grid_m = M_pad // tm_eff
    grid = (grid_m, nk)

    itemsize = lambda a: a.dtype.itemsize
    weight_bytes = w12.size * itemsize(w12) + wc_t.size * itemsize(wc_t)
    cost = pl.CostEstimate(
        flops=6 * M_pad * H * F_pad,                 # 2*M*H*(2F) up + 2*M*F*H down
        transcendentals=M_pad * F_pad,               # sigmoid
        bytes_accessed=(x2d.size * itemsize(x2d)
                        + grid_m * weight_bytes      # weights re-streamed per M tile
                        + M_pad * H * itemsize(hidden_states)),
    )

    out2d = pl.pallas_call(
        functools.partial(_qwen_mlp_kernel, tf=tf),
        out_shape=jax.ShapeDtypeStruct((M_pad, H), hidden_states.dtype),
        grid_spec=pltpu.PrefetchScalarGridSpec(
            num_scalar_prefetch=0,
            grid=grid,
            in_specs=[
                pl.BlockSpec((tm_eff, H), lambda i, k: (i, 0)),   # x tile
                pl.BlockSpec((H, 2 * tf), lambda i, k: (0, k)),   # fused W1|W2 tile
                pl.BlockSpec((tf, H), lambda i, k: (k, 0)),       # Wc tile
            ],
            out_specs=pl.BlockSpec((tm_eff, H), lambda i, k: (i, 0)),
            scratch_shapes=[pltpu.VMEM((tm_eff, H), jnp.float32)],
        ),
        compiler_params=pltpu.CompilerParams(
            dimension_semantics=("parallel", "arbitrary"),
            vmem_limit_bytes=vmem_limit_bytes,
        ),
        cost_estimate=cost,
    )(x2d, w12, wc_t)

    if M_pad != M:
        out2d = out2d[:M]
    return out2d.reshape(B, S, H)


def qwen_mlp(hidden_states, w1, w2, c_proj, *, tm=None, tf=None, compute_dtype=None):
    """Convenience wrapper: prep weights (normally done once at model init) + call.

    For bf16 inference pass compute_dtype=jnp.bfloat16: the kernel casts the
    activations to the weight dtype so both matmuls use the bf16 MXU path.
    """
    w12, wc_t, tf_eff = prepare_qwen_mlp_weights(
        w1, w2, c_proj, tf=tf, compute_dtype=compute_dtype)
    return qwen_mlp_prepared(hidden_states, w12, wc_t, tf_eff, tm=tm)


def qwen_mlp_ref(hidden_states, w1, w2, c_proj):
    a1 = hidden_states @ w1.T
    a2 = hidden_states @ w2.T
    inter = a1 * (a2 * jax.nn.sigmoid(a2))
    return inter @ c_proj.T


if __name__ == "__main__":
    # Small config consistent with the module.
    batch, seq = 2, 8
    hidden_size = 32
    ffn_hidden_size = 128
    ff_dim = ffn_hidden_size // 2  # 64

    key = jax.random.PRNGKey(0)
    kx, k1, k2, k3 = jax.random.split(key, 4)

    x = jax.random.normal(kx, (batch, seq, hidden_size), dtype=jnp.float32)
    # Torch Linear layout: [out_features, in_features].
    w1 = jax.random.normal(k1, (ff_dim, hidden_size), dtype=jnp.float32) * 0.05
    w2 = jax.random.normal(k2, (ff_dim, hidden_size), dtype=jnp.float32) * 0.05
    c_proj = jax.random.normal(k3, (hidden_size, ff_dim), dtype=jnp.float32) * 0.05
    # TODO(synk): bias path (no_bias=False) not exercised; Qwen default is bias-free.

    # Weight prep hoisted (done once, as at model init), then the kernel call.
    w12, wc_t, tf_eff = prepare_qwen_mlp_weights(w1, w2, c_proj)
    out = qwen_mlp_prepared(x, w12, wc_t, tf_eff)
    out = jax.block_until_ready(out)

    ref = qwen_mlp_ref(x, w1, w2, c_proj)
    assert out.shape == (batch, seq, hidden_size)
    assert jnp.allclose(out, ref, atol=1e-5, rtol=1e-5), "mismatch vs reference"
    print("KERNEL_OK")
</pallas_src>

<mosaic_0001>
module attributes {stable_mosaic.version = 11 : i64} {
  func.func @_qwen_mlp_kernel(%arg0: i32, %arg1: i32, %arg2: memref<16x32xf32, #tpu.memory_space<vmem>>, %arg3: memref<32x256xf32, #tpu.memory_space<vmem>>, %arg4: memref<128x32xf32, #tpu.memory_space<vmem>>, %arg5: memref<16x32xf32, #tpu.memory_space<vmem>>, %arg6: memref<16x32xf32, #tpu.memory_space<vmem>>) attributes {dimension_semantics = [#tpu.dimension_semantics<parallel>, #tpu.dimension_semantics<arbitrary>], iteration_bounds = array<i64: 1, 1>, scalar_prefetch = 0 : i64, scratch_operands = 1 : i64, tpu.core_type = #tpu.core_type<tc>, window_params = [{transform_indices = @transform_0, window_bounds = array<i64: 16, 32>}, {transform_indices = @transform_1, window_bounds = array<i64: 32, 256>}, {transform_indices = @transform_2, window_bounds = array<i64: 128, 32>}, {transform_indices = @transform_3, window_bounds = array<i64: 16, 32>}]} {
    %c0 = arith.constant 0 : index
    %c0_0 = arith.constant 0 : index
    %0 = vector.load %arg2[%c0, %c0_0] : memref<16x32xf32, #tpu.memory_space<vmem>>, vector<16x32xf32>
    %c0_1 = arith.constant 0 : index
    %c0_2 = arith.constant 0 : index
    %1 = vector.load %arg3[%c0_1, %c0_2] : memref<32x256xf32, #tpu.memory_space<vmem>>, vector<32x256xf32>
    %cst = arith.constant dense<0.000000e+00> : vector<16x256xf32>
    %2 = tpu.matmul %0, %1, %cst {dimension_numbers = #tpu.dot_dimension_numbers<[1], [0], [0], [1], [0, 0, 1, 1], [], []>} : vector<16x32xf32>, vector<32x256xf32>, vector<16x256xf32> -> vector<16x256xf32>
    %3 = vector.extract_strided_slice %2 {offsets = [0, 0], sizes = [16, 128], strides = [1, 1]} : vector<16x256xf32> to vector<16x128xf32>
    %4 = vector.extract_strided_slice %2 {offsets = [0, 128], sizes = [16, 128], strides = [1, 1]} : vector<16x256xf32> to vector<16x128xf32>
    %5 = arith.negf %4 : vector<16x128xf32>
    %6 = math.exp %5 : vector<16x128xf32>
    %cst_3 = arith.constant 1.000000e+00 : f32
    %7 = vector.broadcast %cst_3 : f32 to vector<16x128xf32>
    %8 = arith.addf %7, %6 : vector<16x128xf32>
    %9 = arith.divf %7, %8 : vector<16x128xf32>
    %10 = arith.mulf %4, %9 : vector<16x128xf32>
    %11 = arith.mulf %3, %10 : vector<16x128xf32>
    %c0_4 = arith.constant 0 : index
    %c0_5 = arith.constant 0 : index
    %12 = vector.load %arg4[%c0_4, %c0_5] : memref<128x32xf32, #tpu.memory_space<vmem>>, vector<128x32xf32>
    %cst_6 = arith.constant dense<0.000000e+00> : vector<16x32xf32>
    %13 = tpu.matmul %11, %12, %cst_6 {dimension_numbers = #tpu.dot_dimension_numbers<[1], [0], [0], [1], [0, 0, 1, 1], [], []>} : vector<16x128xf32>, vector<128x32xf32>, vector<16x32xf32> -> vector<16x32xf32>
    %c0_i32 = arith.constant 0 : i32
    %14 = arith.cmpi eq, %arg1, %c0_i32 : i32
    %15 = arith.extui %14 : i1 to i32
    %c0_i32_7 = arith.constant 0 : i32
    %16 = arith.cmpi ne, %15, %c0_i32_7 : i32
    scf.if %16 {
      %c0_12 = arith.constant 0 : index
      %c0_13 = arith.constant 0 : index
      %23 = vector.load %arg6[%c0_12, %c0_13] : memref<16x32xf32, #tpu.memory_space<vmem>>, vector<16x32xf32>
      tpu.vector_store %arg6[%c0_12, %c0_13], %13 {strides = array<i32>} : memref<16x32xf32, #tpu.memory_space<vmem>>, vector<16x32xf32>,
    } else {
    }
    %c0_i32_8 = arith.constant 0 : i32
    %17 = arith.cmpi sgt, %arg1, %c0_i32_8 : i32
    %18 = arith.extui %17 : i1 to i32
    %c0_i32_9 = arith.constant 0 : i32
    %19 = arith.cmpi ne, %18, %c0_i32_9 : i32
    scf.if %19 {
      %c0_12 = arith.constant 0 : index
      %c0_13 = arith.constant 0 : index
      %23 = vector.load %arg6[%c0_12, %c0_13] : memref<16x32xf32, #tpu.memory_space<vmem>>, vector<16x32xf32>
      %24 = arith.addf %23, %13 : vector<16x32xf32>
      %c0_14 = arith.constant 0 : index
      %c0_15 = arith.constant 0 : index
      %25 = vector.load %arg6[%c0_14, %c0_15] : memref<16x32xf32, #tpu.memory_space<vmem>>, vector<16x32xf32>
      tpu.vector_store %arg6[%c0_14, %c0_15], %24 {strides = array<i32>} : memref<16x32xf32, #tpu.memory_space<vmem>>, vector<16x32xf32>,
    } else {
    }
    %c0_i32_10 = arith.constant 0 : i32
    %20 = arith.cmpi eq, %arg1, %c0_i32_10 : i32
    %21 = arith.extui %20 : i1 to i32
    %c0_i32_11 = arith.constant 0 : i32
    %22 = arith.cmpi ne, %21, %c0_i32_11 : i32
    scf.if %22 {
      %c0_12 = arith.constant 0 : index
      %c0_13 = arith.constant 0 : index
      %23 = vector.load %arg6[%c0_12, %c0_13] : memref<16x32xf32, #tpu.memory_space<vmem>>, vector<16x32xf32>
      %c0_14 = arith.constant 0 : index
      %c0_15 = arith.constant 0 : index
      %24 = vector.load %arg5[%c0_14, %c0_15] : memref<16x32xf32, #tpu.memory_space<vmem>>, vector<16x32xf32>
      tpu.vector_store %arg5[%c0_14, %c0_15], %23 {strides = array<i32>} : memref<16x32xf32, #tpu.memory_space<vmem>>, vector<16x32xf32>,
    } else {
    }
    return
  }
  func.func @transform_0(%arg0: i32, %arg1: i32) -> (i32, i32) {
    %c0_i32 = arith.constant 0 : i32
    %c0_i32_0 = arith.constant 0 : i32
    return %arg0, %c0_i32 : i32, i32
  }
  func.func @transform_1(%arg0: i32, %arg1: i32) -> (i32, i32) {
    %c0_i32 = arith.constant 0 : i32
    %c0_i32_0 = arith.constant 0 : i32
    return %c0_i32, %arg1 : i32, i32
  }
  func.func @transform_2(%arg0: i32, %arg1: i32) -> (i32, i32) {
    %c0_i32 = arith.constant 0 : i32
    %c0_i32_0 = arith.constant 0 : i32
    return %arg1, %c0_i32 : i32, i32
  }
  func.func @transform_3(%arg0: i32, %arg1: i32) -> (i32, i32) {
    %c0_i32 = arith.constant 0 : i32
    %c0_i32_0 = arith.constant 0 : i32
    return %arg0, %c0_i32 : i32, i32
  }
}

</mosaic_0001>

<bundles_post_ra>
// kernel: tpu_custom_call.1
= control target key start
LH: loop header
LB: loop body
LE: loop exit
PB: predicated region body
PF: predicated region fallthrough
CT: control target
= control target key end

     0   :  { %s371_s0 = inlined_call_operand.vmem [shape: f32[16,32], index: 0, kind: input, shape index: {}]   ;;  %s372_s1 = inlined_call_operand.vmem [shape: f32[32,256], index: 1, kind: input, shape index: {}]   ;;  %s373_s2 = inlined_call_operand.vmem [shape: f32[128,32], index: 2, kind: input, shape index: {}]   ;;  %s374_s3 = inlined_call_operand.hbm [shape: f32[16,32], index: 3, kind: output, shape index: {}]  }
   0x1   :  { %v24_v0 = vld [vmem:[%s372_s1 + $0x38] sm:$0xff]  ;;  %v22_v1 = vld [vmem:[%s372_s1 + $0x28] sm:$0xff]  ;;  %v23_v3 = vld [vmem:[%s372_s1 + $0x30] sm:$0xff] }
   0x2   :  { %67 = vmatpush.msra.mxu1 %v24_v0  ;;  %v20_v2 = vld [vmem:[%s372_s1 + $0x18] sm:$0xff]  ;;  %v21_v4 = vld [vmem:[%s372_s1 + $0x20] sm:$0xff]  ;;  %44 = vmatpush.msra.mxu0 %v23_v3 }
   0x4   :  { %68 = vmatpush.msra.mxu1 %v22_v1 }
   0x5   :  { %8 = vsyncpa [#allocation4], 0  ;;  %v18_v5 = vld [vmem:[%s372_s1 + $0x8] sm:$0xff]  ;;  %v19_v6 = vld [vmem:[%s372_s1 + $0x10] sm:$0xff]  ;;  %vm25_vm0 = vcmask 261120   ;;  %45 = vmatpush.msra.mxu0 %v21_v4  ;;  %s260_s10 = smov 128  }
   0x6   :  { %69 = vmatpush.msra.mxu1 %v20_v2  ;;  %v15_v7 = vld [vmem:[%s371_s0] sm:$0xff]  ;;  %v16_v9 = vld [vmem:[%s371_s0 + $0x8] sm:$0xff]  ;;  %v135_v10 = vld [vmem:[%s373_s2 + $0x78] sm:$0xff]  ;;  %s188_s0 = sshll.u32 %s374_s3, 4  ;;  %s261_s11 = smov 8   ;;  %s189_s0 = int_to_ptr.hbm [resolvable:$true] %s188_s0 }
   0x7   :  { %v17_v8 = vld [vmem:[%s372_s1] sm:$0xff]  ;;  %46 = vmatpush.msra.mxu0 %v19_v6  ;;  %136 = vmatpush.msra.mxu2 %v135_v10  ;;  %v134_v11 = vld [vmem:[%s373_s2 + $0x70] sm:$0xff]  ;;  %v133_v12 = vld [vmem:[%s373_s2 + $0x68] sm:$0xff] }
   0x8   :  { %70 = vmatpush.msra.mxu1 %v18_v5  ;;  %206 = vmatpush.msra.mxu3 %v135_v10  ;;  %v132_v13 = vld [vmem:[%s373_s2 + $0x60] sm:$0xff]  ;;  %v131_v14 = vld [vmem:[%s373_s2 + $0x58] sm:$0xff]  ;;  %v130_v15 = vld [vmem:[%s373_s2 + $0x50] sm:$0xff] }
   0x9   :  { %202 = vmatmul.msk.f32.vlgmr.msra.gmra.mxu1 %vm25_vm0, %v15_v7  ;;  %47 = vmatpush.msra.mxu0 %v17_v8  ;;  %v129_v16 = vld [vmem:[%s373_s2 + $0x48] sm:$0xff]  ;;  %v128_v17 = vld [vmem:[%s373_s2 + $0x40] sm:$0xff]  ;;  %v127_v18 = vld [vmem:[%s373_s2 + $0x38] sm:$0xff] }
   0xa   :  { %200 = vmatmul.msk.f32.vlgmr.msra.gmra.mxu0 %vm25_vm0, %v15_v7  ;;  %137 = vmatpush.msra.mxu2 %v134_v11  ;;  %v126_v19 = vld [vmem:[%s373_s2 + $0x30] sm:$0xff]  ;;  %v125_v20 = vld [vmem:[%s373_s2 + $0x28] sm:$0xff]  ;;  %v124_v21 = vld [vmem:[%s373_s2 + $0x20] sm:$0xff] }
   0xb   :  { %207 = vmatpush.msra.mxu3 %v134_v11  ;;  %v123_v22 = vld [vmem:[%s373_s2 + $0x18] sm:$0xff]  ;;  %v122_v23 = vld [vmem:[%s373_s2 + $0x10] sm:$0xff]  ;;  %v121_v24 = vld [vmem:[%s373_s2 + $0x8] sm:$0xff] }
   0xc   :  { %138 = vmatpush.msra.mxu2 %v133_v12  ;;  %v120_v25 = vld [vmem:[%s373_s2] sm:$0xff]  ;;  %s259_s2 = smov [#allocation3]  }
   0xd   :  { %208 = vmatpush.msra.mxu3 %v133_v12  ;;  %s186_s7 = sshll.u32 %s259_s2, 4  ;;  %s187_s7 = int_to_ptr.vmem [resolvable:$true] %s186_s7 }
   0xe   :  { %139 = vmatpush.msra.mxu2 %v132_v13 }
   0xf   :  { %209 = vmatpush.msra.mxu3 %v132_v13 }
  0x10   :  { %140 = vmatpush.msra.mxu2 %v131_v14 }
  0x11   :  { %203 = vmatmul.msk.f32.gmra.mxu1 %vm25_vm0, %v16_v9  ;;  %210 = vmatpush.msra.mxu3 %v131_v14 }
  0x12   :  { %201 = vmatmul.msk.f32.gmra.mxu0 %vm25_vm0, %v16_v9  ;;  %141 = vmatpush.msra.mxu2 %v130_v15 }
  0x13   :  { %211 = vmatpush.msra.mxu3 %v130_v15 }
  0x14   :  { %142 = vmatpush.msra.mxu2 %v129_v16 }
  0x15   :  { %212 = vmatpush.msra.mxu3 %v129_v16 }
  0x16   :  { %143 = vmatpush.msra.mxu2 %v128_v17 }
  0x17   :  { %213 = vmatpush.msra.mxu3 %v128_v17 }
  0x18   :  { %144 = vmatpush.msra.mxu2 %v127_v18 }
  0x19   :  { %214 = vmatpush.msra.mxu3 %v127_v18 }
  0x1a   :  { %145 = vmatpush.msra.mxu2 %v126_v19 }
  0x1b   :  { %215 = vmatpush.msra.mxu3 %v126_v19 }
  0x1c   :  { %146 = vmatpush.msra.mxu2 %v125_v20 }
  0x1d   :  { %216 = vmatpush.msra.mxu3 %v125_v20 }
  0x1e   :  { %147 = vmatpush.msra.mxu2 %v124_v21 }
  0x1f   :  { %217 = vmatpush.msra.mxu3 %v124_v21 }
  0x20   :  { %148 = vmatpush.msra.mxu2 %v123_v22 }
  0x21   :  { %218 = vmatpush.msra.mxu3 %v123_v22 }
  0x22   :  { %149 = vmatpush.msra.mxu2 %v122_v23 }
  0x23   :  { %219 = vmatpush.msra.mxu3 %v122_v23 }
  0x24   :  { %150 = vmatpush.msra.mxu2 %v121_v24 }
  0x25   :  { %220 = vmatpush.msra.mxu3 %v121_v24 }
  0x26   :  { %151 = vmatpush.msra.mxu2 %v120_v25 }
  0x27   :  { %221 = vmatpush.msra.mxu3 %v120_v25 }
  0x86   :  { %v72_v26 = vpop.f32.mrf.mxu1 }
  0x87   :  { %v204_v27 = vmul.f32 -1.442695, %v72_v26  ;;  %v49_v43 = vpop.f32.mrf.mxu0 }
  0x89   :  { %225 = vpow2.f32 %v204_v27 }
  0x8e   :  { %v75_v28 = vpop.f32.mrf.mxu1 }
  0x8f   :  { %v226_v29 = vpop.eup %225  ;;  %v205_v30 = vmul.f32 -1.442695, %v75_v28  ;;  %v52_v57 = vpop.f32.mrf.mxu0 }
  0x90   :  { %v84_v31 = vadd.f32 1.0, %v226_v29 }
  0x91   :  { %227 = vpow2.f32 %v205_v30 }
  0x92   :  { %229 = vrcp.f32 %v84_v31  ;;  %v97_v37 = vand.u32 2147483648, %v84_v31  ;;  %v95_v39 = vand.u32 2147483647, %v84_v31  ;;  %vm91_vm2 = vweird.f32 %v84_v31 }
  0x94   :  { %v98_v42 = vor.u32 1.1754944e-38, %v97_v37  ;;  %vm96_vm4 = vcmp.eq.f32.partialorder %v95_v39, 8.507059e+37 }
  0x97   :  { %v228_v32 = vpop.eup %227 }
  0x98   :  { %v230_v33 = vpop.eup %229  ;;  %v85_v34 = vadd.f32 1.0, %v228_v32 }
  0x99   :  { %v87_v35 = vmul.f32 %v230_v33, %v84_v31  ;;  %vm92_vm1 = vweird.f32 %v230_v33 }
  0x9a   :  { %231 = vrcp.f32 %v85_v34  ;;  %vm93_vm3 = vmor %vm91_vm2, %vm92_vm1  ;;  %v112_v49 = vand.u32 2147483648, %v85_v34  ;;  %v110_v51 = vand.u32 2147483647, %v85_v34  ;;  %vm106_vm6 = vweird.f32 %v85_v34 }
  0x9b   :  { %v88_v36 = vsub.f32 1.0, %v87_v35 }
  0x9c   :  { %v113_v54 = vor.u32 1.1754944e-38, %v112_v49  ;;  %vm111_vm8 = vcmp.eq.f32.partialorder %v110_v51, 8.507059e+37 }
  0x9d   :  { %v89_v38 = vmul.f32 %v230_v33, %v88_v36 }
  0x9f   :  { %v90_v40 = vadd.f32 %v230_v33, %v89_v38 }
  0xa0   :  { %v232_v41 = vpop.eup %231 }
  0xa1   :  { %v94_v44 = vsel %vm93_vm3, %v230_v33, %v90_v40  ;;  %v102_v45 = vmul.f32 %v232_v41, %v85_v34  ;;  %vm107_vm5 = vweird.f32 %v232_v41 }
  0xa2   :  { %v99_v46 = vsel %vm96_vm4, %v98_v42, %v94_v44  ;;  %vm108_vm7 = vmor %vm106_vm6, %vm107_vm5 }
  0xa3   :  { %v116_v47 = vmul.f32 %v99_v46, %v72_v26  ;;  %v103_v48 = vsub.f32 1.0, %v102_v45 }
  0xa5   :  { %v104_v50 = vmul.f32 %v232_v41, %v103_v48  ;;  %v118_v52 = vmul.f32 %v116_v47, %v49_v43 }
  0xa7   :  { %v105_v53 = vadd.f32 %v232_v41, %v104_v50  ;;  %152 = vmatmul.f32.vlgmr.msra.gmra.mxu2 %v118_v52 }
  0xa9   :  { %v109_v55 = vsel %vm108_vm7, %v232_v41, %v105_v53 }
  0xaa   :  { %v114_v56 = vsel %vm111_vm8, %v113_v54, %v109_v55 }
  0xab   :  { %v117_v58 = vmul.f32 %v114_v56, %v75_v28 }
  0xad   :  { %v119_v59 = vmul.f32 %v117_v58, %v52_v57 }
  0xaf   :  { %155 = vmatmul.f32.vlgmr.msra.gmra.mxu3 %v119_v59 }
 0x12a   :  { %v153_v60 = vpop.f32.mrf.mxu2 }
 0x12b   :  { %163 = vst.msk [vmem:[#allocation2] sm:$0xff] %vm25_vm0, %v153_v60 }
 0x132   :  { %v156_v61 = vpop.f32.mrf.mxu3  ;;  %v178_v62 = vld [vmem:[#allocation2] sm:$0xff] }
 0x133   :  { %164 = vst.msk [vmem:[#allocation2 + $0x8] sm:$0xff] %vm25_vm0, %v156_v61 }
 0x134   :  { %180 = vst.msk [vmem:[#allocation3] sm:$0xff] %vm25_vm0, %v178_v62 }
 0x13a   :  { %v179_v63 = vld [vmem:[#allocation2 + $0x8] sm:$0xff] }
 0x13b   :  { %181 = vst.msk [vmem:[#allocation3 + $0x8] sm:$0xff] %vm25_vm0, %v179_v63 }
 0x13c   :  { %194 = dma.vmem_to_hbm [thread:$0]  %s187_s7, 256, %s189_s0, [#allocation4], %s260_s10, %s260_s10, %s261_s11  }
 0x13d   :  { %257 = dma.done.wait [#allocation4], 256  }
 0x13e   :  { %258 = vsyncadd [#allocation4], 4294967040 }
 0x13f   :  { %199 = vsyncpa [#allocation4], 1 }

</bundles_post_ra>
